<compile_context>
chip_gen: v6e
topology: v6e:2x2x1
jax: 0.10.0
libtpu: 0.0.40
codegen_flags: <defaults>
</compile_context>

<pallas_src>
import functools

import jax
import jax.numpy as jnp
from jax import lax
from jax.experimental import pallas as pl
from jax.experimental.pallas import tpu as pltpu

_LANES = 128


# --------------------------------------------------------------------------
# Kernels
# --------------------------------------------------------------------------
def _pos_emb_rows_kernel(inv_freq_ref, phase_ref, o_ref, *, tile_s: int):
    """Output block = rows [s0, s0+tile_s) x all (padded) columns.

    angle(p, j) = p * inv_freq[j] + phase[j]
                = i * inv_freq[j] + (s0 * inv_freq[j] + phase[j])     (p = s0 + i)
    The parenthesised term is a (1, D) per-step constant -> one small FMA.
    """
    S, D = o_ref.shape
    s0 = (pl.program_id(0) * tile_s).astype(jnp.float32)
    base = s0 * inv_freq_ref[...] + phase_ref[...]                  # (1, D)
    pos = lax.broadcasted_iota(jnp.int32, (S, D), 0).astype(jnp.float32)
    o_ref[...] = jnp.sin(pos * inv_freq_ref[...] + base).astype(o_ref.dtype)


def _pos_emb_slab_kernel(scale_ref, off_ref, o_ref, *, tile_rows: int):
    """Lane-dense slab: flat index f = r*128 + c, p = f // d_model, j = f % d_model.

    With 128 = pos_per_row * d_model:
      angle = r * (pos_per_row*inv_freq[j]) + (pos_off[c]*inv_freq[j] + phase[j])
            = r * scale[c] + off[c]
    scale/off are per-lane wrapper tables; the block's r0 is folded per step.
    """
    S, L = o_ref.shape
    r0 = (pl.program_id(0) * tile_rows).astype(jnp.float32)
    base = r0 * scale_ref[...] + off_ref[...]                       # (1, 128)
    row = lax.broadcasted_iota(jnp.int32, (S, L), 0).astype(jnp.float32)
    o_ref[...] = jnp.sin(row * scale_ref[...] + base).astype(o_ref.dtype)


# --------------------------------------------------------------------------
# Wrapper helpers
# --------------------------------------------------------------------------
def _round_up(n: int, m: int) -> int:
    return -(-n // m) * m


def _chip_profile():
    """Returns (target output-block bytes, whether the chip has 2 TensorCores)."""
    kind = ""
    try:
        kind = jax.devices()[0].device_kind.lower()
    except Exception:  # pragma: no cover - conservative fallback
        pass
    two_tc = "v7" in kind
    if "v6" in kind or "v7" in kind:
        block_bytes = 8 << 20   # 2 buffers = 16 MiB < 32 MiB scoped-VMEM default
    else:
        block_bytes = 4 << 20   # v5e / unknown: 16 MiB scoped-VMEM default
    return block_bytes, two_tc


def _choose_tile_rows(total_rows: int, row_bytes: int,
                      block_bytes: int, two_tc: bool) -> int:
    """Sublane-aligned tile height (or full extent for tiny tables)."""
    if total_rows <= 8:
        return total_rows                       # single full-extent block
    max_tile = max(8, (block_bytes // max(row_bytes, 1)) // 8 * 8)
    aligned = (total_rows // 8) * 8
    if two_tc:
        # Even, near-equal block count so both TensorCores get balanced work.
        n = max(2, -(-total_rows // max_tile))
        if n % 2:
            n += 1
        tile = _round_up(-(-total_rows // n), 8)
        return max(8, min(tile, aligned))
    if total_rows <= max_tile:
        return total_rows                       # one big block, no step overhead
    return min(max_tile, aligned)


def _column_tables(d_model: int, j: jnp.ndarray):
    """Per-column inverse frequency and phase (parity * pi/2)."""
    two_i = (j - (j & 1)).astype(jnp.float32)
    inv_freq = jnp.power(jnp.float32(10000.0), -two_i / jnp.float32(d_model))
    phase = (j & 1).astype(jnp.float32) * jnp.float32(jnp.pi / 2.0)
    return inv_freq, phase


# --------------------------------------------------------------------------
# Table builder (the actual Pallas launch)
# --------------------------------------------------------------------------
def positional_encoding(seq_len: int, d_model: int,
                        out_dtype=jnp.float32) -> jax.Array:
    """Builds encoding[:seq_len, :d_model] with a Pallas TPU kernel."""
    assert seq_len >= 1 and d_model >= 1
    block_bytes, two_tc = _chip_profile()
    itemsize = jnp.dtype(out_dtype).itemsize
    total = seq_len * d_model
    cparams = pltpu.CompilerParams(dimension_semantics=("parallel",))

    # --- Lane-dense slab path: d_model | 128 and total is 128-aligned. ------
    if d_model < _LANES and _LANES % d_model == 0 and total % _LANES == 0:
        pos_per_row = _LANES // d_model
        total_rows = total // _LANES

        c = jnp.arange(_LANES, dtype=jnp.int32)
        inv_freq, phase = _column_tables(d_model, c % d_model)
        pos_off = (c // d_model).astype(jnp.float32)
        scale = inv_freq * jnp.float32(pos_per_row)   # angle increment per slab row
        off = pos_off * inv_freq + phase              # per-lane constant term

        tile_rows = _choose_tile_rows(total_rows, _LANES * itemsize,
                                      block_bytes, two_tc)
        grid = (pl.cdiv(total_rows, tile_rows),)
        lane_spec = pl.BlockSpec((1, _LANES), lambda i: (0, 0))

        slab = pl.pallas_call(
            functools.partial(_pos_emb_slab_kernel, tile_rows=tile_rows),
            out_shape=jax.ShapeDtypeStruct((total_rows, _LANES), out_dtype),
            grid_spec=pltpu.PrefetchScalarGridSpec(
                num_scalar_prefetch=0,
                grid=grid,
                in_specs=[lane_spec, lane_spec],
                out_specs=pl.BlockSpec((tile_rows, _LANES), lambda i: (i, 0)),
            ),
            compiler_params=cparams,
        )(scale.reshape(1, _LANES), off.reshape(1, _LANES))
        # Row-major reshape -> (seq_len, d_model); layout-preserving.
        return slab.reshape(seq_len, d_model)

    # --- Row path: columns padded to a multiple of 128 (unmasked stores). ---
    d_pad = _round_up(d_model, _LANES)
    j = jnp.arange(d_pad, dtype=jnp.int32)
    inv_freq, phase = _column_tables(d_model, jnp.minimum(j, d_model - 1))
    valid = j < d_model
    inv_freq = jnp.where(valid, inv_freq, 0.0).astype(jnp.float32)
    phase = jnp.where(valid, phase, 0.0).astype(jnp.float32)

    tile_s = _choose_tile_rows(seq_len, d_pad * itemsize, block_bytes, two_tc)
    grid = (pl.cdiv(seq_len, tile_s),)
    col_spec = pl.BlockSpec((1, d_pad), lambda i: (0, 0))

    out = pl.pallas_call(
        functools.partial(_pos_emb_rows_kernel, tile_s=tile_s),
        out_shape=jax.ShapeDtypeStruct((seq_len, d_pad), out_dtype),
        grid_spec=pltpu.PrefetchScalarGridSpec(
            num_scalar_prefetch=0,
            grid=grid,
            in_specs=[col_spec, col_spec],
            out_specs=pl.BlockSpec((tile_s, d_pad), lambda i: (i, 0)),
        ),
        compiler_params=cparams,
    )(inv_freq.reshape(1, d_pad), phase.reshape(1, d_pad))
    return out if d_pad == d_model else out[:, :d_model]


# --------------------------------------------------------------------------
# Module-equivalent wrappers
# --------------------------------------------------------------------------
def positional_embedding(x: jax.Array, d_model: int, maxlen: int,
                         out_dtype=jnp.float32) -> jax.Array:
    """Per-call forward of PositionalEmbedding: returns encoding[:seq_len, :]."""
    seq_len = x.shape[1]
    assert 1 <= seq_len <= maxlen, "seq_len must be in [1, maxlen]"
    return positional_encoding(seq_len, d_model, out_dtype)


class PositionalEmbedding:
    """Mirrors the PyTorch module: the (maxlen, d_model) table is built once
    by the Pallas kernel at construction; forward just slices [:seq_len]."""

    def __init__(self, d_model: int, maxlen: int, out_dtype=jnp.float32):
        self.d_model = d_model
        self.maxlen = maxlen
        self.encoding = positional_encoding(maxlen, d_model, out_dtype)

    def __call__(self, x: jax.Array) -> jax.Array:
        return self.encoding[: x.shape[1], :]


# --------------------------------------------------------------------------
# Reference & self-test
# --------------------------------------------------------------------------
def _reference(seq_len: int, d_model: int) -> jnp.ndarray:
    pos = jnp.arange(seq_len, dtype=jnp.float32)[:, None]
    two_i = jnp.arange(0, d_model, 2, dtype=jnp.float32)
    angle = pos / (10000.0 ** (two_i / d_model))
    enc = jnp.zeros((seq_len, d_model), jnp.float32)
    enc = enc.at[:, 0::2].set(jnp.sin(angle))
    enc = enc.at[:, 1::2].set(jnp.cos(angle))
    return enc


if __name__ == "__main__":
    d_model, maxlen = 32, 16
    key = jax.random.PRNGKey(0)
    x = jax.random.normal(key, (2, 8, d_model), dtype=jnp.float32)

    # Module-style: table built once to maxlen (slab path), sliced in forward.
    module = PositionalEmbedding(d_model, maxlen)
    out = jax.block_until_ready(module(x))
    assert out.shape == (x.shape[1], d_model)
    assert jnp.allclose(out, _reference(x.shape[1], d_model), atol=2e-5, rtol=2e-5)

    # Per-call forward (slab path: d_model=32 divides 128, total 128-aligned).
    out_call = jax.block_until_ready(positional_embedding(x, d_model, maxlen))
    assert jnp.allclose(out_call, _reference(8, d_model), atol=2e-5, rtol=2e-5)

    # Lane-aligned row path (d_model is a multiple of 128).
    x2 = jax.random.normal(key, (2, 16, 128), dtype=jnp.float32)
    out2 = jax.block_until_ready(positional_embedding(x2, d_model=128, maxlen=16))
    assert jnp.allclose(out2, _reference(16, 128), atol=2e-5, rtol=2e-5)

    # Padded lane-dense row path (d_model neither divides nor is a multiple of 128).
    x3 = jax.random.normal(key, (2, 8, 48), dtype=jnp.float32)
    out3 = jax.block_until_ready(positional_embedding(x3, d_model=48, maxlen=16))
    assert jnp.allclose(out3, _reference(8, 48), atol=2e-5, rtol=2e-5)

    # seq_len*d_model not 128-aligned -> padded row path as well.
    x4 = jax.random.normal(key, (2, 6, d_model), dtype=jnp.float32)
    out4 = jax.block_until_ready(positional_embedding(x4, d_model, maxlen))
    assert jnp.allclose(out4, _reference(6, d_model), atol=2e-5, rtol=2e-5)

    print("KERNEL_OK")
</pallas_src>

<mosaic_0001>
module attributes {stable_mosaic.version = 11 : i64} {
  func.func @_pos_emb_slab_kernel(%arg0: i32, %arg1: memref<1x128xf32, #tpu.memory_space<vmem>>, %arg2: memref<1x128xf32, #tpu.memory_space<vmem>>, %arg3: memref<4x128xf32, #tpu.memory_space<vmem>>) attributes {dimension_semantics = [#tpu.dimension_semantics<parallel>], iteration_bounds = array<i64: 1>, scalar_prefetch = 0 : i64, scratch_operands = 0 : i64, tpu.core_type = #tpu.core_type<tc>, window_params = [{pipeline_mode = #tpu.pipeline_mode<synchronous>, transform_indices = @transform_0, window_bounds = array<i64: 1, 128>}, {pipeline_mode = #tpu.pipeline_mode<synchronous>, transform_indices = @transform_1, window_bounds = array<i64: 1, 128>}, {transform_indices = @transform_2, window_bounds = array<i64: 4, 128>}]} {
    %c4_i32 = arith.constant 4 : i32
    %0 = arith.muli %arg0, %c4_i32 : i32
    %1 = arith.sitofp %0 : i32 to f32
    %c0 = arith.constant 0 : index
    %c0_0 = arith.constant 0 : index
    %2 = vector.load %arg1[%c0, %c0_0] : memref<1x128xf32, #tpu.memory_space<vmem>>, vector<1x128xf32>
    %3 = vector.broadcast %1 : f32 to vector<1x128xf32>
    %4 = arith.mulf %3, %2 : vector<1x128xf32>
    %c0_1 = arith.constant 0 : index
    %c0_2 = arith.constant 0 : index
    %5 = vector.load %arg2[%c0_1, %c0_2] : memref<1x128xf32, #tpu.memory_space<vmem>>, vector<1x128xf32>
    %6 = arith.addf %4, %5 : vector<1x128xf32>
    %7 = tpu.iota {dimensions = array<i32: 0>} : vector<4x128xi32>
    %8 = arith.sitofp %7 : vector<4x128xi32> to vector<4x128xf32>
    %c0_3 = arith.constant 0 : index
    %c0_4 = arith.constant 0 : index
    %9 = vector.load %arg1[%c0_3, %c0_4] : memref<1x128xf32, #tpu.memory_space<vmem>>, vector<1x128xf32>
    %10 = vector.broadcast %9 : vector<1x128xf32> to vector<4x128xf32>
    %11 = arith.mulf %8, %10 : vector<4x128xf32>
    %12 = vector.broadcast %6 : vector<1x128xf32> to vector<4x128xf32>
    %13 = arith.addf %11, %12 : vector<4x128xf32>
    %14 = math.sin %13 : vector<4x128xf32>
    %c0_5 = arith.constant 0 : index
    %c0_6 = arith.constant 0 : index
    %15 = vector.load %arg3[%c0_5, %c0_6] : memref<4x128xf32, #tpu.memory_space<vmem>>, vector<4x128xf32>
    tpu.vector_store %arg3[%c0_5, %c0_6], %14 {strides = array<i32>} : memref<4x128xf32, #tpu.memory_space<vmem>>, vector<4x128xf32>,
    return
  }
  func.func @transform_0(%arg0: i32) -> (i32, i32) {
    %c0_i32 = arith.constant 0 : i32
    %c0_i32_0 = arith.constant 0 : i32
    %c0_i32_1 = arith.constant 0 : i32
    return %c0_i32, %c0_i32_0 : i32, i32
  }
  func.func @transform_1(%arg0: i32) -> (i32, i32) {
    %c0_i32 = arith.constant 0 : i32
    %c0_i32_0 = arith.constant 0 : i32
    %c0_i32_1 = arith.constant 0 : i32
    return %c0_i32, %c0_i32_0 : i32, i32
  }
  func.func @transform_2(%arg0: i32) -> (i32, i32) {
    %c0_i32 = arith.constant 0 : i32
    %c0_i32_0 = arith.constant 0 : i32
    return %arg0, %c0_i32 : i32, i32
  }
}

</mosaic_0001>

<bundles_post_ra>
// kernel: tpu_custom_call.1
= control target key start
LH: loop header
LB: loop body
LE: loop exit
PB: predicated region body
PF: predicated region fallthrough
CT: control target
= control target key end

     0   :  { %7 = vsyncpa [#allocation3], 0  ;;  %s285_s0 = inlined_call_operand.hbm [shape: f32[1,128], index: 0, kind: input, shape index: {}]   ;;  %s286_s1 = inlined_call_operand.vmem [shape: f32[1,128], index: 1, kind: input, shape index: {}]   ;;  %s287_s2 = inlined_call_operand.hbm [shape: f32[4,128], index: 2, kind: output, shape index: {}]  }
   0x1   :  { %8 = vsyncpa [#allocation4], 0  ;;  %s232_s9 = smov [#allocation2]  }
   0x2   :  { %s15_s10 = sshll.u32 %s232_s9, 4  ;;  %s16_s10 = int_to_ptr.vmem [resolvable:$true] %s15_s10 }
   0x3   :  { %s196_s11 = scalar_lea.vmem %s16_s10, 16  ;;  %s200_s12 = scalar_lea.vmem %s16_s10, 32 }
   0x4   :  { %p197_p0 = scmp.ne.s32.totalorder %s16_s10, %s196_s11  ;;  %p201_p1 = scmp.lt.s32.totalorder %s16_s10, %s16_s10 }
   0x5   :  { %p202_p2 = scmp.lt.s32.totalorder %s200_s12, %s196_s11 }
   0x7   :  { %p203_p3 = por %p202_p2, %p201_p1 }
   0x9   :  { %p204_p4 = pnand %p203_p3, %p197_p0 }
   0xb   :  { %207 = shalt.err (!%p204_p4)
}
   0xc   :  { %18 = dma.hbm_to_vmem [thread:$0]  %s285_s0, 16, %s16_s10, [#allocation3]  }
   0xd   :  { %228 = dma.done.wait [#allocation3], 16  }
   0xe   :  { %229 = vsyncadd [#allocation3], 4294967280  ;;  %v31_v0 = vlaneseq  ;;  %v26_v4 = vld [vmem:[#allocation2] sm:$0x1]  ;;  %v233_v23 = vmov 683565275  }
   0xf   :  { %v29_v5 = vld [vmem:[%s286_s1] sm:$0x1]  ;;  %v28_v6 = vmul.f32 0.0, %v26_v4  ;;  %v234_v25 = vmov 2475754826   ;;  %s239_s0 = smov [#allocation5]  }
  0x10   :  { %v32_v1 = vshrl.u32 %v31_v0, 7  ;;  %v235_v27 = vmov 2131351028   ;;  %v236_v29 = vmov 2102212464   ;;  %s159_s1 = sshll.u32 %s239_s0, 4  ;;  %s160_s1 = int_to_ptr.vmem [resolvable:$true] %s159_s1 }
  0x11   :  { %v30_v8 = vadd.f32 %v29_v5, %v28_v6  ;;  %v237_v31 = vmov 920167782   ;;  %v238_v38 = vmov 1326507024   ;;  %s208_s17 = scalar_lea.vmem %s160_s1, 64  ;;  %p213_p6 = scmp.lt.s32.totalorder %s160_s1, %s160_s1 }
  0x12   :  { %v37_v2 = vsub.s32 0, %v32_v1  ;;  %v33_v3 = vcvt.s32.f32 %v32_v1  ;;  %p209_p5 = scmp.ne.s32.totalorder %s160_s1, %s208_s17  ;;  %p214_p7 = scmp.lt.s32.totalorder %s208_s17, %s208_s17 }
  0x14   :  { %v38_v7 = vrot.slane %v26_v4, %v37_v2  ;;  %v45_v10 = vrot.slane %v30_v8, %v37_v2  ;;  %p215_p8 = por %p214_p7, %p213_p6 }
  0x16   :  { %v40_v9 = vmul.f32 %v38_v7, %v33_v3  ;;  %p216_p9 = pnand %p215_p8, %p209_p5 }
  0x18   :  { %v261_v11 = vadd.f32 %v45_v10, %v40_v9 }
  0x1a   :  { %v51_v12 = vand.u32 2139095040, %v261_v11  ;;  %v48_v14 = vand.u32 2147483647, %v261_v11  ;;  %vm50_vm7 = vcmp.lt.s32.totalorder %v261_v11, 0  ;;  %vm140_vm12 = vweird.f32 %v261_v11 }
  0x1c   :  { %v52_v13 = vshrl.u32 %v51_v12, 23  ;;  %v55_v17 = vand.u32 8388607, %v48_v14  ;;  %vm49_vm8 = vcmp.le.f32.partialorder %v48_v14, 0.7853982 }
  0x1e   :  { %v168_v15 = vadd.s32 4294967169, %v52_v13  ;;  %v56_v20 = vor.u32 8388608, %v55_v17 }
  0x20   :  { %v58_v16 = vadd.s32 1, %v168_v15  ;;  %v96_v40 = vshll.u32 %v56_v20, 8 }
  0x22   :  { %vm59_vm0 = vcmp.gt.s32.totalorder %v58_v16, 0 }
  0x23   :  { %v60_v18 = vsel %vm59_vm0, %v58_v16, 0 }
  0x24   :  { %v62_v19 = vand.u32 31, %v60_v18  ;;  %v61_v21 = vshrl.u32 %v60_v18, 5 }
  0x26   :  { %v63_v22 = vsub.s32 32, %v62_v19  ;;  %v65_v24 = vshll.u32 %v233_v23, %v62_v19  ;;  %v68_v26 = vshll.u32 %v234_v25, %v62_v19  ;;  %v71_v28 = vshll.u32 %v235_v27, %v62_v19 }
  0x27   :  { %v74_v30 = vshll.u32 %v236_v29, %v62_v19  ;;  %v77_v32 = vshll.u32 %v237_v31, %v62_v19  ;;  %vm80_vm1 = vcmp.lt.s32.totalorder %v61_v21, 1  ;;  %vm83_vm2 = vcmp.lt.s32.totalorder %v61_v21, 4 }
  0x28   :  { %v64_v33 = vshrl.u32 %v233_v23, %v63_v22  ;;  %v66_v34 = vshrl.u32 %v234_v25, %v63_v22  ;;  %v69_v35 = vshrl.u32 %v235_v27, %v63_v22  ;;  %v72_v36 = vshrl.u32 %v236_v29, %v63_v22 }
  0x29   :  { %v75_v37 = vshrl.u32 %v237_v31, %v63_v22  ;;  %v78_v39 = vshrl.u32 %v238_v38, %v63_v22  ;;  %vm81_vm3 = vcmp.lt.s32.totalorder %v61_v21, 2  ;;  %vm82_vm4 = vcmp.lt.s32.totalorder %v61_v21, 3 }
  0x2a   :  { %v67_v41 = vor.u32 %v66_v34, %v65_v24  ;;  %v70_v42 = vor.u32 %v69_v35, %v68_v26  ;;  %v73_v43 = vor.u32 %v72_v36, %v71_v28 }
  0x2b   :  { %v76_v44 = vor.u32 %v75_v37, %v74_v30  ;;  %v79_v45 = vor.u32 %v78_v39, %v77_v32 }
  0x2c   :  { %v84_v46 = vsel %vm80_vm1, %v64_v33, %v67_v41  ;;  %v85_v47 = vsel %vm83_vm2, %v73_v43, 2102212464  ;;  %v88_v48 = vsel %vm80_vm1, %v67_v41, %v70_v42  ;;  %v92_v49 = vsel %vm80_vm1, %v70_v42, %v73_v43 }
  0x2d   :  { %v86_v50 = vsel %vm82_vm4, %v70_v42, %v85_v47  ;;  %v89_v51 = vsel %vm83_vm2, %v76_v44, 920167782  ;;  %v93_v52 = vsel %vm83_vm2, %v79_v45, 1326507024 }
  0x2e   :  { %v90_v53 = vsel %vm82_vm4, %v73_v43, %v89_v51  ;;  %v94_v54 = vsel %vm82_vm4, %v76_v44, %v93_v52  ;;  %v87_v55 = vsel %vm81_vm3, %v84_v46, %v86_v50 }
  0x2f   :  { %v91_v56 = vsel %vm81_vm3, %v88_v48, %v90_v53  ;;  %v95_v57 = vsel %vm81_vm3, %v92_v49, %v94_v54  ;;  %v103_v62 = vmul.u32 %v96_v40, %v87_v55 }
  0x30   :  { %v267_v58 = vmul.u32.u64.low %v96_v40, %v95_v57  ;;  %v268_v59 = vmul.u32.u64.high %v96_v40, %v95_v57, %v267_v58  ;;  %v270_v60 = vmul.u32.u64.low %v96_v40, %v91_v56  ;;  %v271_v61 = vmul.u32.u64.high %v96_v40, %v91_v56, %v270_v60 }
  0x32   :  { %vm105_vm5 = vc.u32 %v268_v59, %v270_v60  ;;  %v106_v63 = vadd.s32 1, %v271_v61  ;;  %v104_v10 = vadd.s32 %v270_v60, %v268_v59 }
  0x34   :  { %v107_v0 = vsel %vm105_vm5, %v106_v63, %v271_v61 }
  0x35   :  { %v108_v1 = vadd.s32 %v107_v0, %v103_v62 }
  0x37   :  { %v109_v2 = vadd.s32 536870912, %v108_v1 }
  0x39   :  { %v110_v3 = vshrl.u32 %v109_v2, 30 }
  0x3b   :  { %v111_v4 = vshll.u32 %v110_v3, 30  ;;  %v134_v25 = vsub.s32 4, %v110_v3 }
  0x3d   :  { %v112_v5 = vsub.s32 %v108_v1, %v111_v4  ;;  %v135_v28 = vsel %vm50_vm7, %v134_v25, %v110_v3 }
  0x3e   :  { %v137_v30 = vsel %vm49_vm8, 0, %v135_v28 }
  0x3f   :  { %v114_v6 = vsub.s32 0, %v112_v5  ;;  %v141_v31 = vadd.s32 3, %v137_v30 }
  0x41   :  { %v169_v7 = vmin.u32 %v114_v6, %v112_v5  ;;  %v142_v32 = vand.u32 3, %v141_v31 }
  0x43   :  { %v116_v8 = vclz %v169_v7  ;;  %vm147_vm9 = vcmp.eq.s32.totalorder %v142_v32, 2  ;;  %vm144_vm10 = vcmp.eq.s32.totalorder %v142_v32, 0  ;;  %vm143_vm11 = vcmp.lt.s32.totalorder %v142_v32, 2 }
  0x45   :  { %v170_v9 = vadd.s32 4294967294, %v116_v8 }
  0x47   :  { %vm171_vm6 = vcmp.lt.s32.totalorder %v170_v9, 0 }
  0x48   :  { %v119_v12 = vsel %vm171_vm6, 0, %v170_v9 }
  0x49   :  { %v120_v13 = vsub.s32 32, %v119_v12  ;;  %v121_v15 = vshll.u32 %v112_v5, %v119_v12  ;;  %v124_v16 = vsub.s32 4294967266, %v119_v12 }
  0x4b   :  { %v122_v17 = vshrl.u32 %v104_v10, %v120_v13  ;;  %v125_v18 = vadd.s32 127, %v124_v16 }
  0x4d   :  { %v123_v19 = vor.u32 %v122_v17, %v121_v15  ;;  %v126_v20 = vshll.u32 %v125_v18, 23 }
  0x4f   :  { %v127_v21 = vor.u32 4788187, %v126_v20  ;;  %v130_v22 = vcvt.s32.f32 %v123_v19 }
  0x51   :  { %v128_v23 = vand.u32 2147483647, %v127_v21 }
  0x53   :  { %v131_v24 = vmul.f32 %v130_v22, %v128_v23 }
  0x55   :  { %v132_v26 = vxor.u32 2147483648, %v131_v24 }
  0x57   :  { %v133_v27 = vsel %vm50_vm7, %v132_v26, %v131_v24 }
  0x58   :  { %v136_v29 = vsel %vm49_vm8, %v261_v11, %v133_v27 }
  0x59   :  { %184 = vcosq.f32 %v136_v29 }
  0x5a   :  { %186 = vsinq.f32 %v136_v29 }
  0x66   :  { %v185_v33 = vpop.eup %184 }
  0x67   :  { %v187_v34 = vpop.eup %186  ;;  %v148_v35 = vxor.u32 2147483648, %v185_v33 }
  0x68   :  { %v145_v36 = vxor.u32 2147483648, %v187_v34 }
  0x69   :  { %v149_v14 = vsel %vm147_vm9, %v148_v35, %v187_v34 }
  0x6a   :  { %v146_v37 = vsel %vm144_vm10, %v185_v33, %v145_v36 }
  0x6b   :  { %v150_v38 = vsel %vm143_vm11, %v146_v37, %v149_v14 }
  0x6c   :  { %v151_v39 = vsel %vm140_vm12, nan, %v150_v38 }
  0x6d   :  { %152 = vst [vmem:[#allocation5] sm:$0xf] %v151_v39 }
  0x6e   :  { %219 = shalt.err (!%p216_p9)
}
  0x6f   :  { %162 = dma.vmem_to_hbm [thread:$0]  %s160_s1, 64, %s287_s2, [#allocation4]  }
  0x70   :  { %230 = dma.done.wait [#allocation4], 64  }
  0x71   :  { %231 = vsyncadd [#allocation4], 4294967232 }
  0x72   :  { %166 = vsyncpa [#allocation3], 1 }
  0x73   :  { %167 = vsyncpa [#allocation4], 1 }

</bundles_post_ra>
